<compile_context>
chip_gen: v7x
topology: tpu7x:2x2x1
jax: 0.10.0
libtpu: 0.0.40
codegen_flags: <defaults>
</compile_context>

<pallas_src>
import jax
import jax.numpy as jnp
from jax.experimental import pallas as pl
from jax.experimental.pallas import tpu as pltpu

SELU_ALPHA = 1.6732632423543772
SELU_SCALE = 1.0507009873554805


def attention_kernel(enc_ref, hid_ref, w1e_ref, w1h_ref, b1_ref, w2_ref, out_ref):
    bt, t, h = enc_ref.shape
    enc = enc_ref[...]                                    # (bt, T, H)
    hid = hid_ref[0]                                      # (bt, H)

    # Linear(2H -> H) on concat([enc, hid_repeated]) decomposed into two dots.
    pre_enc = jnp.dot(
        enc.reshape(bt * t, h), w1e_ref[...],
        preferred_element_type=jnp.float32).reshape(bt, t, h)          # (bt, T, H)
    pre_hid = jnp.dot(
        hid, w1h_ref[...],
        preferred_element_type=jnp.float32) + b1_ref[...]              # (bt, H)
    pre = pre_enc + pre_hid[:, None, :]                                # (bt, T, H)

    # SELU (f32, VPU/EUP).
    act = SELU_SCALE * jnp.where(pre > 0, pre, SELU_ALPHA * (jnp.exp(pre) - 1.0))

    # Linear(H -> 1): VPU multiply + lane reduce (b2 omitted: softmax shift-invariant).
    scores = jnp.sum(act * w2_ref[...], axis=-1)                       # (bt, T)

    # Softmax over the timestep axis.
    m = jnp.max(scores, axis=-1, keepdims=True)
    e = jnp.exp(scores - m)
    weights = e / jnp.sum(e, axis=-1, keepdims=True)                   # (bt, T)

    # Context: per-batch weights^T @ enc as a batched MXU contraction over T.
    ctx = jnp.einsum("blt,bth->blh", weights[:, None, :], enc,
                     preferred_element_type=jnp.float32)               # (bt, 1, H)
    out_ref[0] = ctx[:, 0, :].astype(out_ref.dtype)                    # (bt, H)


def _pick_block_b(B, T, H, target_rows=512, tile_budget_bytes=8 * 1024 * 1024):
    """Pick a batch-tile size: a divisor of B that keeps the (1, block_b, H)
    hidden/output blocks (8,128)-friendly (block_b == B or block_b % 8 == 0),
    keeps the double-buffered enc tile within budget, and prefers at least
    `target_rows` matmul rows per step."""
    divisors = [d for d in range(1, B + 1) if B % d == 0]
    aligned = [d for d in divisors if d == B or d % 8 == 0]
    if not aligned:
        aligned = [B]
    best = aligned[0]
    for d in aligned:
        if 2 * d * T * H * 4 > tile_budget_bytes:
            break
        best = d
        if d * T >= target_rows:
            break
    return best


def attention_forward(encoder_outputs, hidden_state, params, block_b=None):
    """encoder_outputs: (B, T, H); hidden_state: (1, B, H). Returns (1, B, H)."""
    B, T, H = encoder_outputs.shape
    w1, b1, w2, b2 = params
    del b2  # softmax is shift-invariant; "+ b2" before it is a no-op.

    # Trace-time (free) param reshapes: split W1, row-vector W2 / b1.
    w1_enc = w1[:H, :]                    # (H, H)
    w1_hid = w1[H:, :]                    # (H, H)
    b1_row = b1.reshape(1, H)
    w2_row = w2.reshape(1, H)

    if block_b is None:
        block_b = _pick_block_b(B, T, H)
    grid = (B // block_b,)

    out = pl.pallas_call(
        attention_kernel,
        out_shape=jax.ShapeDtypeStruct((1, B, H), jnp.float32),
        grid_spec=pltpu.PrefetchScalarGridSpec(
            num_scalar_prefetch=0,
            grid=grid,
            in_specs=[
                pl.BlockSpec((block_b, T, H), lambda b: (b, 0, 0)),   # encoder_outputs
                pl.BlockSpec((1, block_b, H), lambda b: (0, b, 0)),   # hidden_state (no transpose)
                pl.BlockSpec((H, H), lambda b: (0, 0)),               # W1[:H]
                pl.BlockSpec((H, H), lambda b: (0, 0)),               # W1[H:]
                pl.BlockSpec((1, H), lambda b: (0, 0)),               # b1
                pl.BlockSpec((1, H), lambda b: (0, 0)),               # W2 row
            ],
            out_specs=pl.BlockSpec((1, block_b, H), lambda b: (0, b, 0)),
        ),
        compiler_params=pltpu.CompilerParams(
            dimension_semantics=("parallel",),
            vmem_limit_bytes=32 * 1024 * 1024,
        ),
    )(encoder_outputs, hidden_state, w1_enc, w1_hid, b1_row, w2_row)

    return out                                                         # (1, B, H)


def init_params(key, hidden_size):
    """Deterministic synthetic init (Linear weights in (in, out) layout)."""
    k1, k2, k3, k4 = jax.random.split(key, 4)
    bound1 = 1.0 / (2.0 * hidden_size) ** 0.5
    w1 = jax.random.uniform(k1, (2 * hidden_size, hidden_size), jnp.float32, -bound1, bound1)
    b1 = jax.random.uniform(k2, (hidden_size,), jnp.float32, -bound1, bound1)
    bound2 = 1.0 / hidden_size ** 0.5
    w2 = jax.random.uniform(k3, (hidden_size, 1), jnp.float32, -bound2, bound2)
    b2 = jax.random.uniform(k4, (1,), jnp.float32, -bound2, bound2)
    return w1, b1, w2, b2


def attention_reference(encoder_outputs, hidden_state, params):
    """Pure-JAX reference mirroring the PyTorch forward (including b2), for validation."""
    w1, b1, w2, b2 = params
    B, T, H = encoder_outputs.shape
    hid = jnp.transpose(hidden_state, (1, 0, 2))                      # (B, 1, H)
    hid_rep = jnp.broadcast_to(hid, (B, T, H))
    cat = jnp.concatenate([encoder_outputs, hid_rep], axis=-1)        # (B, T, 2H)
    pre = cat @ w1 + b1
    act = SELU_SCALE * jnp.where(pre > 0, pre, SELU_ALPHA * (jnp.exp(pre) - 1.0))
    scores = act @ w2 + b2                                            # (B, T, 1)
    weights = jax.nn.softmax(scores, axis=1)
    ctx = jnp.einsum("btl,bth->blh", weights, encoder_outputs)        # (B, 1, H)
    return jnp.transpose(ctx, (1, 0, 2))                              # (1, B, H)


if __name__ == "__main__":
    B, T, H = 4, 8, 32
    key = jax.random.PRNGKey(0)
    k_enc, k_hid, k_par = jax.random.split(key, 3)

    encoder_outputs = jax.random.normal(k_enc, (B, T, H), jnp.float32)
    hidden_state = jax.random.normal(k_hid, (1, B, H), jnp.float32)
    params = init_params(k_par, H)

    out = attention_forward(encoder_outputs, hidden_state, params)
    out = jax.block_until_ready(out)

    ref = attention_reference(encoder_outputs, hidden_state, params)
    assert out.shape == (1, B, H), out.shape
    assert jnp.allclose(out, ref, atol=1e-5, rtol=1e-5), "mismatch vs reference"

    print("KERNEL_OK")
</pallas_src>

<mosaic_0001>
module attributes {stable_mosaic.version = 11 : i64} {
  func.func @attention_kernel(%arg0: i32, %arg1: memref<4x8x32xf32, #tpu.memory_space<vmem>>, %arg2: memref<1x4x32xf32, #tpu.memory_space<vmem>>, %arg3: memref<32x32xf32, #tpu.memory_space<vmem>>, %arg4: memref<32x32xf32, #tpu.memory_space<vmem>>, %arg5: memref<1x32xf32, #tpu.memory_space<vmem>>, %arg6: memref<1x32xf32, #tpu.memory_space<vmem>>, %arg7: memref<1x4x32xf32, #tpu.memory_space<vmem>>) attributes {dimension_semantics = [#tpu.dimension_semantics<parallel>], iteration_bounds = array<i64: 1>, scalar_prefetch = 0 : i64, scratch_operands = 0 : i64, tpu.core_type = #tpu.core_type<tc>, window_params = [{transform_indices = @transform_0, window_bounds = array<i64: 4, 8, 32>}, {transform_indices = @transform_1, window_bounds = array<i64: 1, 4, 32>}, {pipeline_mode = #tpu.pipeline_mode<synchronous>, transform_indices = @transform_2, window_bounds = array<i64: 32, 32>}, {pipeline_mode = #tpu.pipeline_mode<synchronous>, transform_indices = @transform_3, window_bounds = array<i64: 32, 32>}, {pipeline_mode = #tpu.pipeline_mode<synchronous>, transform_indices = @transform_4, window_bounds = array<i64: 1, 32>}, {pipeline_mode = #tpu.pipeline_mode<synchronous>, transform_indices = @transform_5, window_bounds = array<i64: 1, 32>}, {transform_indices = @transform_6, window_bounds = array<i64: 1, 4, 32>}]} {
    %c0 = arith.constant 0 : index
    %c0_0 = arith.constant 0 : index
    %c0_1 = arith.constant 0 : index
    %0 = vector.load %arg1[%c0, %c0_0, %c0_1] : memref<4x8x32xf32, #tpu.memory_space<vmem>>, vector<4x8x32xf32>
    %c0_2 = arith.constant 0 : index
    %c0_3 = arith.constant 0 : index
    %c0_4 = arith.constant 0 : index
    %1 = vector.load %arg2[%c0_2, %c0_3, %c0_4] : memref<1x4x32xf32, #tpu.memory_space<vmem>>, vector<1x4x32xf32>
    %2 = vector.shape_cast %1 : vector<1x4x32xf32> to vector<4x32xf32>
    %3 = vector.shape_cast %0 : vector<4x8x32xf32> to vector<32x32xf32>
    %c0_5 = arith.constant 0 : index
    %c0_6 = arith.constant 0 : index
    %4 = vector.load %arg3[%c0_5, %c0_6] : memref<32x32xf32, #tpu.memory_space<vmem>>, vector<32x32xf32>
    %cst = arith.constant dense<0.000000e+00> : vector<32x32xf32>
    %5 = tpu.matmul %3, %4, %cst {dimension_numbers = #tpu.dot_dimension_numbers<[1], [0], [0], [1], [0, 0, 1, 1], [], []>} : vector<32x32xf32>, vector<32x32xf32>, vector<32x32xf32> -> vector<32x32xf32>
    %6 = vector.shape_cast %5 : vector<32x32xf32> to vector<4x8x32xf32>
    %c0_7 = arith.constant 0 : index
    %c0_8 = arith.constant 0 : index
    %7 = vector.load %arg4[%c0_7, %c0_8] : memref<32x32xf32, #tpu.memory_space<vmem>>, vector<32x32xf32>
    %cst_9 = arith.constant dense<0.000000e+00> : vector<4x32xf32>
    %8 = tpu.matmul %2, %7, %cst_9 {dimension_numbers = #tpu.dot_dimension_numbers<[1], [0], [0], [1], [0, 0, 1, 1], [], []>} : vector<4x32xf32>, vector<32x32xf32>, vector<4x32xf32> -> vector<4x32xf32>
    %c0_10 = arith.constant 0 : index
    %c0_11 = arith.constant 0 : index
    %9 = vector.load %arg5[%c0_10, %c0_11] : memref<1x32xf32, #tpu.memory_space<vmem>>, vector<1x32xf32>
    %10 = vector.broadcast %9 : vector<1x32xf32> to vector<4x32xf32>
    %11 = arith.addf %8, %10 : vector<4x32xf32>
    %12 = vector.shape_cast %11 : vector<4x32xf32> to vector<4x1x32xf32>
    %13 = vector.broadcast %12 : vector<4x1x32xf32> to vector<4x8x32xf32>
    %14 = arith.addf %6, %13 : vector<4x8x32xf32>
    %cst_12 = arith.constant 0.000000e+00 : f32
    %15 = vector.broadcast %cst_12 : f32 to vector<4x8x32xf32>
    %16 = arith.cmpf ogt, %14, %15 : vector<4x8x32xf32>
    %17 = math.exp %14 : vector<4x8x32xf32>
    %cst_13 = arith.constant 1.000000e+00 : f32
    %18 = vector.broadcast %cst_13 : f32 to vector<4x8x32xf32>
    %19 = arith.subf %17, %18 : vector<4x8x32xf32>
    %cst_14 = arith.constant 1.67326319 : f32
    %20 = vector.broadcast %cst_14 : f32 to vector<4x8x32xf32>
    %21 = arith.mulf %20, %19 : vector<4x8x32xf32>
    %22 = arith.select %16, %14, %21 : vector<4x8x32xi1>, vector<4x8x32xf32>
    %cst_15 = arith.constant 1.05070102 : f32
    %23 = vector.broadcast %cst_15 : f32 to vector<4x8x32xf32>
    %24 = arith.mulf %23, %22 : vector<4x8x32xf32>
    %c0_16 = arith.constant 0 : index
    %c0_17 = arith.constant 0 : index
    %25 = vector.load %arg6[%c0_16, %c0_17] : memref<1x32xf32, #tpu.memory_space<vmem>>, vector<1x32xf32>
    %26 = vector.shape_cast %25 : vector<1x32xf32> to vector<1x1x32xf32>
    %27 = vector.broadcast %26 : vector<1x1x32xf32> to vector<4x8x32xf32>
    %28 = arith.mulf %24, %27 : vector<4x8x32xf32>
    %cst_18 = arith.constant dense<0.000000e+00> : vector<4x8xf32>
    %29 = vector.multi_reduction <add>, %28, %cst_18 [2] : vector<4x8x32xf32> to vector<4x8xf32>
    %cst_19 = arith.constant dense<0xFF800000> : vector<4xf32>
    %30 = vector.multi_reduction <maximumf>, %29, %cst_19 [1] : vector<4x8xf32> to vector<4xf32>
    %31 = vector.shape_cast %30 : vector<4xf32> to vector<4x1xf32>
    %32 = vector.broadcast %31 : vector<4x1xf32> to vector<4x8xf32>
    %33 = arith.subf %29, %32 : vector<4x8xf32>
    %34 = math.exp %33 : vector<4x8xf32>
    %cst_20 = arith.constant dense<0.000000e+00> : vector<4xf32>
    %35 = vector.multi_reduction <add>, %34, %cst_20 [1] : vector<4x8xf32> to vector<4xf32>
    %36 = vector.shape_cast %35 : vector<4xf32> to vector<4x1xf32>
    %37 = vector.broadcast %36 : vector<4x1xf32> to vector<4x8xf32>
    %38 = arith.divf %34, %37 : vector<4x8xf32>
    %39 = vector.shape_cast %38 : vector<4x8xf32> to vector<4x1x8xf32>
    "tpu.trace_start"() <{level = 10 : i32, message = "blt,bth->blh"}> : () -> ()
    %cst_21 = arith.constant dense<0.000000e+00> : vector<4x1x32xf32>
    %40 = tpu.matmul %39, %0, %cst_21 {dimension_numbers = #tpu.dot_dimension_numbers<[2], [1], [1], [2], [0, 0, 0, 1, 1, 2], [0], [0]>} : vector<4x1x8xf32>, vector<4x8x32xf32>, vector<4x1x32xf32> -> vector<4x1x32xf32>
    "tpu.trace_stop"() : () -> ()
    %41 = vector.shape_cast %40 : vector<4x1x32xf32> to vector<4x32xf32>
    %c0_22 = arith.constant 0 : index
    %c0_23 = arith.constant 0 : index
    %c0_24 = arith.constant 0 : index
    %42 = vector.load %arg7[%c0_22, %c0_23, %c0_24] : memref<1x4x32xf32, #tpu.memory_space<vmem>>, vector<1x4x32xf32>
    %43 = vector.shape_cast %42 : vector<1x4x32xf32> to vector<4x32xf32>
    %44 = vector.shape_cast %41 : vector<4x32xf32> to vector<1x4x32xf32>
    tpu.vector_store %arg7[%c0_22, %c0_23, %c0_24], %44 {strides = array<i32>} : memref<1x4x32xf32, #tpu.memory_space<vmem>>, vector<1x4x32xf32>,
    return
  }
  func.func @transform_0(%arg0: i32) -> (i32, i32, i32) {
    %c0_i32 = arith.constant 0 : i32
    %c0_i32_0 = arith.constant 0 : i32
    %c0_i32_1 = arith.constant 0 : i32
    return %arg0, %c0_i32, %c0_i32_0 : i32, i32, i32
  }
  func.func @transform_1(%arg0: i32) -> (i32, i32, i32) {
    %c0_i32 = arith.constant 0 : i32
    %c0_i32_0 = arith.constant 0 : i32
    %c0_i32_1 = arith.constant 0 : i32
    return %c0_i32, %arg0, %c0_i32_0 : i32, i32, i32
  }
  func.func @transform_2(%arg0: i32) -> (i32, i32) {
    %c0_i32 = arith.constant 0 : i32
    %c0_i32_0 = arith.constant 0 : i32
    %c0_i32_1 = arith.constant 0 : i32
    return %c0_i32, %c0_i32_0 : i32, i32
  }
  func.func @transform_3(%arg0: i32) -> (i32, i32) {
    %c0_i32 = arith.constant 0 : i32
    %c0_i32_0 = arith.constant 0 : i32
    %c0_i32_1 = arith.constant 0 : i32
    return %c0_i32, %c0_i32_0 : i32, i32
  }
  func.func @transform_4(%arg0: i32) -> (i32, i32) {
    %c0_i32 = arith.constant 0 : i32
    %c0_i32_0 = arith.constant 0 : i32
    %c0_i32_1 = arith.constant 0 : i32
    return %c0_i32, %c0_i32_0 : i32, i32
  }
  func.func @transform_5(%arg0: i32) -> (i32, i32) {
    %c0_i32 = arith.constant 0 : i32
    %c0_i32_0 = arith.constant 0 : i32
    %c0_i32_1 = arith.constant 0 : i32
    return %c0_i32, %c0_i32_0 : i32, i32
  }
  func.func @transform_6(%arg0: i32) -> (i32, i32, i32) {
    %c0_i32 = arith.constant 0 : i32
    %c0_i32_0 = arith.constant 0 : i32
    %c0_i32_1 = arith.constant 0 : i32
    return %c0_i32, %arg0, %c0_i32_0 : i32, i32, i32
  }
}

</mosaic_0001>

<bundles_post_ra>
// kernel: tpu_custom_call.1
= control target key start
LH: loop header
LB: loop body
LE: loop exit
PB: predicated region body
PF: predicated region fallthrough
CT: control target
= control target key end

     0   :  { %11 = vsyncpa [#allocation3], 0  ;;  %s1314_s0 = inlined_call_operand.hbm [shape: f32[4,8,32], index: 0, kind: input, shape index: {}]   ;;  %s1315_s1 = inlined_call_operand.hbm [shape: f32[1,4,32], index: 1, kind: input, shape index: {}]   ;;  %s1316_s2 = inlined_call_operand.hbm [shape: f32[32,32], index: 2, kind: input, shape index: {}]   ;;  %s1317_s3 = inlined_call_operand.hbm [shape: f32[32,32], index: 3, kind: input, shape index: {}]   ;;  %s1318_s4 = inlined_call_operand.vmem [shape: f32[1,32], index: 4, kind: input, shape index: {}]   ;;  %s1319_s5 = inlined_call_operand.vmem [shape: f32[1,32], index: 5, kind: input, shape index: {}]   ;;  %s1320_s6 = inlined_call_operand.hbm [shape: f32[1,4,32], index: 6, kind: output, shape index: {}]  }
   0x1   :  { %12 = vsyncpa [#allocation6], 0 }
   0x2   :  { %13 = vsyncpa [#allocation9], 0 }
   0x3   :  { %14 = vsyncpa [#allocation4], 0  ;;  %s1104_s21 = smov [#allocation5]   ;;  %s1105_s23 = smov [#allocation2]  }
   0x4   :  { %s33_s22 = sshll.u32 %s1104_s21, 4  ;;  %s20_s24 = sshll.u32 %s1105_s23, 4  ;;  %s34_s22 = int_to_ptr.vmem [resolvable:$true] %s33_s22  ;;  %s1151_s24 = int_to_ptr.vmem [resolvable:$true] %s20_s24 }
   0x5   :  { %s986_s27 = scalar_lea.hbm %s1315_s1, 64 }
   0x6   :  { %p987_p0 = scmp.ne.s32.totalorder %s1315_s1, %s986_s27  ;;  %p990_p1 = scmp.lt.u32.totalorder %s986_s27, %s1315_s1 }
   0x8   :  { %p992_p2 = pnand %p990_p1, %p987_p0 }
   0xa   :  { %995 = shalt.err (!%p992_p2)
}
   0xb   :  { %s996_s8 = scalar_lea.vmem %s34_s22, 64  ;;  %p1001_p4 = scmp.lt.s32.totalorder %s34_s22, %s34_s22 }
   0xc   :  { %p997_p3 = scmp.ne.s32.totalorder %s34_s22, %s996_s8  ;;  %p1002_p5 = scmp.lt.s32.totalorder %s996_s8, %s996_s8 }
   0xe   :  { %p1003_p6 = por %p1002_p5, %p1001_p4 }
  0x10   :  { %p1004_p7 = pnand %p1003_p6, %p997_p3 }
  0x12   :  { %1007 = shalt.err (!%p1004_p7)
}
  0x13   :  { %36 = dma.hbm_to_vmem [thread:$0]  %s1315_s1, 64, %s34_s22, [#allocation6]  }
  0x14   :  { %s1008_s13 = scalar_lea.hbm %s1314_s0, 512 }
  0x15   :  { %p1009_p8 = scmp.ne.s32.totalorder %s1314_s0, %s1008_s13  ;;  %p1012_p9 = scmp.lt.u32.totalorder %s1008_s13, %s1314_s0 }
  0x17   :  { %p1014_p10 = pnand %p1012_p9, %p1009_p8 }
  0x19   :  { %1017 = shalt.err (!%p1014_p10)
}
  0x1a   :  { %s1018_s18 = scalar_lea.vmem %s1151_s24, 512  ;;  %p1023_p12 = scmp.lt.s32.totalorder %s1151_s24, %s1151_s24 }
  0x1b   :  { %p1019_p11 = scmp.ne.s32.totalorder %s1151_s24, %s1018_s18  ;;  %p1024_p13 = scmp.lt.s32.totalorder %s1018_s18, %s1018_s18 }
  0x1d   :  { %p1025_p0 = por %p1024_p13, %p1023_p12 }
  0x1f   :  { %p1026_p1 = pnand %p1025_p0, %p1019_p11 }
  0x21   :  { %1029 = shalt.err (!%p1026_p1)
}
  0x22   :  { %s1106_s1 = smov 128   ;;  %s1107_s19 = smov 8  }
  0x23   :  { %26 = dma.hbm_to_vmem [thread:$0]  %s1314_s0, 512, %s1151_s24, [#allocation3], %s1106_s1, %s1106_s1, %s1107_s19  }
  0x24   :  { %s1108_s22 = smov [#allocation7]   ;;  %s1109_s25 = smov [#allocation8]  }
  0x25   :  { %s42_s23 = sshll.u32 %s1108_s22, 4  ;;  %s54_s26 = sshll.u32 %s1109_s25, 4  ;;  %s43_s23 = int_to_ptr.vmem [resolvable:$true] %s42_s23  ;;  %s1185_s26 = int_to_ptr.vmem [resolvable:$true] %s54_s26 }
  0x26   :  { %s1030_s29 = scalar_lea.hbm %s1316_s2, 512 }
  0x27   :  { %p1031_p2 = scmp.ne.s32.totalorder %s1316_s2, %s1030_s29  ;;  %p1034_p3 = scmp.lt.u32.totalorder %s1030_s29, %s1316_s2 }
  0x29   :  { %p1036_p4 = pnand %p1034_p3, %p1031_p2 }
  0x2b   :  { %1039 = shalt.err (!%p1036_p4)
}
  0x2c   :  { %s1040_s0 = scalar_lea.vmem %s43_s23, 512  ;;  %p1045_p6 = scmp.lt.s32.totalorder %s43_s23, %s43_s23 }
  0x2d   :  { %p1041_p5 = scmp.ne.s32.totalorder %s43_s23, %s1040_s0  ;;  %p1046_p7 = scmp.lt.s32.totalorder %s1040_s0, %s1040_s0 }
  0x2f   :  { %p1047_p8 = por %p1046_p7, %p1045_p6 }
  0x31   :  { %p1048_p9 = pnand %p1047_p8, %p1041_p5 }
  0x33   :  { %1051 = shalt.err (!%p1048_p9)
}
  0x34   :  { %48 = dma.hbm_to_vmem [thread:$0]  %s1316_s2, 512, %s43_s23, [#allocation6], %s1106_s1, %s1106_s1, %s1107_s19  }
  0x35   :  { %s1052_s13 = scalar_lea.hbm %s1317_s3, 512 }
  0x36   :  { %p1053_p10 = scmp.ne.s32.totalorder %s1317_s3, %s1052_s13  ;;  %p1056_p11 = scmp.lt.u32.totalorder %s1052_s13, %s1317_s3 }
  0x38   :  { %p1058_p12 = pnand %p1056_p11, %p1053_p10 }
  0x3a   :  { %1061 = shalt.err (!%p1058_p12)
}
  0x3b   :  { %s1062_s18 = scalar_lea.vmem %s1185_s26, 512  ;;  %p1067_p0 = scmp.lt.s32.totalorder %s1185_s26, %s1185_s26 }
  0x3c   :  { %p1063_p13 = scmp.ne.s32.totalorder %s1185_s26, %s1062_s18  ;;  %p1068_p1 = scmp.lt.s32.totalorder %s1062_s18, %s1062_s18 }
  0x3e   :  { %p1069_p2 = por %p1068_p1, %p1067_p0 }
  0x40   :  { %p1070_p3 = pnand %p1069_p2, %p1063_p13 }
  0x42   :  { %1073 = shalt.err (!%p1070_p3)
}
  0x43   :  { %60 = dma.hbm_to_vmem [thread:$0]  %s1317_s3, 512, %s1185_s26, [#allocation9], %s1106_s1, %s1106_s1, %s1107_s19  }
  0x44   :  { %1096 = dma.done.wait [#allocation3], 512  }
  0x45   :  { %1097 = vsyncadd [#allocation3], 4294966784 }
  0x46   :  { %1098 = dma.done.wait [#allocation6], 576  }
  0x47   :  { %1099 = vsyncadd [#allocation6], 4294966720 }
  0x48   :  { %1100 = dma.done.wait [#allocation9], 512  }
  0x49   :  { %1101 = vsyncadd [#allocation9], 4294966784  ;;  %v1110_v0 = vmov 0.0|0.0   ;;  %vm1111_vm0 = vmmov 0   ;;  %v1112_v1 = vmov 0.0   ;;  %v184_v2 = vld [vmem:[#allocation8] sm:$0xff]  ;;  %v272_v21 = vlaneseq }
  0x4a   :  { %942 = vmatprep.subr.bf16.mxu1 %v1110_v0  ;;  %911 = vmatprep.mubr.msk.f32.mxu1 %vm1111_vm0, %v1112_v1  ;;  %v185_v3 = vld [vmem:[#allocation8 + $0x8] sm:$0xff]  ;;  %v82_v4 = vld [vmem:[#allocation7] sm:$0xff]  ;;  %v186_v7 = vld [vmem:[#allocation8 + $0x10] sm:$0xff]  ;;  %vm86_vm1 = vcmask 261120   ;;  %v1113_v19 = vmov 1966171168  }
  0x4b   :  { %v943_v5 = vpack.c.bf16 %v185_v3, %v184_v2  ;;  %v83_v6 = vld [vmem:[#allocation7 + $0x8] sm:$0xff]  ;;  %v187_v8 = vld [vmem:[#allocation8 + $0x18] sm:$0xff]  ;;  %v84_v10 = vld [vmem:[#allocation7 + $0x10] sm:$0xff]  ;;  %v270_v20 = vunpack.c.l.s4 %v1113_v19  ;;  %v1244_v23 = vshrl.u32 %v272_v21, 7  ;;  %vm390_vm6 = vcmask 1041409  }
  0x4c   :  { %v934_v9 = vpack.c.bf16 %v83_v6, %v82_v4  ;;  %v85_v11 = vld [vmem:[#allocation7 + $0x18] sm:$0xff]  ;;  %v946_v12 = vpack.c.bf16 %v187_v8, %v186_v7  ;;  %v78_v16 = vld [vmem:[#allocation2 + $0x8] sm:$0xff]  ;;  %v1227_v17 = vld [vmem:[#allocation2 + $0x10] sm:$0xff]  ;;  %vm392_vm7 = vcmask 1042434   ;;  %vm394_vm8 = vcmask 1043459  }
  0x4d   :  { %944 = vmatpush3.bf16.msra.mxu1 %v943_v5  ;;  %v938_v13 = vpack.c.bf16 %v85_v11, %v84_v10  ;;  %v77_v14 = vld [vmem:[#allocation2] sm:$0xff]  ;;  %v1236_v18 = vld [vmem:[#allocation2 + $0x18] sm:$0xff]  ;;  %v271_v22 = vunpack.c.0.s8 %v270_v20  ;;  %v1251_v31 = vsub.s32 0, %v1244_v23  ;;  %v373_v20 = vand.u32 127, %v272_v21 }
  0x4e   :  { %935 = vmatprep.subr.bf16.mxu0 %v934_v9  ;;  %945 = vmatprep.subr.bf16.mxu1 %v1110_v0  ;;  %v81_v15 = vld [vmem:[#allocation5] sm:$0xf]  ;;  %vm397_vm9 = vcmask 60416   ;;  %vm510_vm10 = vcmask 64512   ;;  %vm834_vm11 = vcmask 257024  }
  0x4f   :  { %937 = vmatpush3.bf16.msra.mxu0 %v934_v9  ;;  %897 = vmatprep.mubr.msk.f32.mxu0 %vm86_vm1, %v77_v14  ;;  %v857_v24 = vld [vmem:[%s1318_s4] ss:$0 sm:$0xff]  ;;  %v274_v25 = vsub.s32 %v271_v22, %v1244_v23 }
  0x50   :  { %939 = vmatprep.subr.bf16.mxu0 %v938_v13  ;;  %v863_v63 = vld [vmem:[%s1319_s5] ss:$0 sm:$0xff]  ;;  %s1115_s5 = smov [#allocation10]  }
  0x51   :  { %947 = vmatpush3.bf16.msra.mxu1 %v946_v12  ;;  %s842_s21 = sshll.u32 %s1115_s5, 4  ;;  %s843_s21 = int_to_ptr.vmem [resolvable:$true] %s842_s21 }
  0x52   :  { %914 = vmatprep.subr.mxu1 %v1112_v1  ;;  %s1074_s22 = scalar_lea.vmem %s843_s21, 64  ;;  %p1079_p5 = scmp.lt.s32.totalorder %s843_s21, %s843_s21 }
  0x53   :  { %941 = vmatpush3.bf16.msra.mxu0 %v938_v13  ;;  %p1075_p4 = scmp.ne.s32.totalorder %s843_s21, %s1074_s22  ;;  %p1080_p6 = scmp.lt.s32.totalorder %s1074_s22, %s1074_s22 }
  0x54   :  { %912 = vmatmul.mubr.msk.f32.vlgmr.msra.gmra.mrb[0].mxu1 %vm86_vm1, %v81_v15  ;;  %919 = vmatprep.subr.mxu0 %v1112_v1 }
  0x55   :  { %915 = vmatpush3.msra.mxu1 %v77_v14  ;;  %916 = vmatprep.mubr.msk.f32.mxu1 %vm1111_vm0, %v1112_v1  ;;  %p1081_p7 = por %p1080_p6, %p1079_p5 }
  0x56   :  { %898 = vmatmul.mubr.msk.f32.vlgmr.msra.gmra.mrb[0].mxu0 %vm86_vm1, %v78_v16  ;;  %924 = vmatprep.subr.mxu1 %v1112_v1 }
  0x57   :  { %900 = vmatprep.mubr.msk.f32.mxu0 %vm86_vm1, %v1227_v17  ;;  %920 = vmatpush3.msra.mxu0 %v78_v16  ;;  %p1082_p8 = pnand %p1081_p7, %p1075_p4 }
  0x58   :  { %929 = vmatprep.subr.mxu0 %v1112_v1 }
  0x5a   :  { %901 = vmatmul.mubr.msk.f32.gmra.mrb[2].mxu0 %vm86_vm1, %v1236_v18 }
  0x5b   :  { %921 = vmatprep.mubr.msk.f32.mxu0 %vm1111_vm0, %v1112_v1 }
 0x127   :  { %v264_v26 = vpop.f32.mrb[0].mxu1 }
 0x128   :  { %v265_v27 = vadd.f32 %v857_v24, %v264_v26  ;;  %v913_v28 = vpop.f32.mrb[1].mxu1  ;;  %v1266_v24 = vsub.s32 %v373_v20, %v1244_v23 }
 0x129   :  { %v899_v29 = vpop.f32.mrb[0].mxu0 }
 0x12a   :  { %v275_v30 = vrot.slane %v265_v27, %v274_v25  ;;  %v165_v32 = vpop.f32.mrb[1].mxu0 }
 0x12c   :  { %v276_v33 = vcombine.high %v275_v30, %v275_v30  ;;  %v283_v34 = vrot.slane %v275_v30, %v274_v25 }
 0x12d   :  { %v902_v35 = vpop.f32.mrb[2].mxu0 }
 0x12e   :  { %v290_v36 = vrot.slane %v276_v33, %v274_v25  ;;  %v296_v37 = vrot.slane %v283_v34, %v1251_v31  ;;  %v175_v38 = vpop.f32.mrb[3].mxu0  ;;  %v291_v39 = vcombine.high %v283_v34, %v283_v34 }
 0x130   :  { %v300_v40 = vrot.slane %v290_v36, %v1251_v31  ;;  %v313_v41 = vadd.f32 %v296_v37, %v165_v32  ;;  %v292_v42 = vcombine.high %v290_v36, %v290_v36  ;;  %v304_v43 = vrot.slane %v291_v39, %v1251_v31 }
 0x131   :  { %v1114_v36 = vmov 0   ;;  %v408_v37 = vsub.s32 1, %v1244_v23  ;;  %v416_v39 = vsub.s32 3, %v1244_v23 }
 0x132   :  { %v314_v44 = vadd.f32 %v899_v29, %v300_v40  ;;  %v321_v45 = vmul.f32 1.442695, %v313_v41  ;;  %v308_v46 = vrot.slane %v292_v42, %v1251_v31  ;;  %v315_v47 = vadd.f32 %v304_v43, %v175_v38  ;;  %961 = vset.pattern.permute.xlu0 %v1114_v36  ;;  %960 = vset.pattern.permute.xlu1 %v1114_v36 }
 0x133   :  { %vm317_vm2 = vcmp.gt.f32.partialorder %v313_v41, 0.0  ;;  %v412_v38 = vsub.s32 2, %v1244_v23 }
 0x134   :  { %v323_v48 = vmul.f32 1.442695, %v314_v44  ;;  %962 = vpow2.f32 %v321_v45  ;;  %v316_v49 = vadd.f32 %v902_v35, %v308_v46  ;;  %v325_v50 = vmul.f32 1.442695, %v315_v47 }
 0x135   :  { %vm318_vm3 = vcmp.gt.f32.partialorder %v314_v44, 0.0  ;;  %vm319_vm4 = vcmp.gt.f32.partialorder %v315_v47, 0.0 }
 0x136   :  { %964 = vpow2.f32 %v323_v48  ;;  %v327_v51 = vmul.f32 1.442695, %v316_v49  ;;  %vm320_vm5 = vcmp.gt.f32.partialorder %v316_v49, 0.0 }
 0x137   :  { %966 = vpow2.f32 %v325_v50 }
 0x138   :  { %968 = vpow2.f32 %v327_v51 }
 0x13e   :  { %v963_v52 = vpop.eup %962 }
 0x13f   :  { %v859_v53 = vadd.f32 -1.0, %v963_v52 }
 0x140   :  { %v965_v54 = vpop.eup %964 }
 0x141   :  { %v967_v55 = vpop.eup %966  ;;  %v860_v56 = vadd.f32 -1.0, %v965_v54  ;;  %v333_v57 = vmul.f32 1.6732632, %v859_v53 }
 0x142   :  { %v969_v58 = vpop.eup %968  ;;  %v861_v59 = vadd.f32 -1.0, %v967_v55 }
 0x143   :  { %v334_v60 = vmul.f32 1.6732632, %v860_v56  ;;  %v862_v61 = vadd.f32 -1.0, %v969_v58  ;;  %v337_v62 = vsel %vm317_vm2, %v313_v41, %v333_v57 }
 0x144   :  { %v341_v0 = vmul.f32 1.050701, %v337_v62  ;;  %v335_v2 = vmul.f32 1.6732632, %v861_v59 }
 0x145   :  { %v336_v3 = vmul.f32 1.6732632, %v862_v61  ;;  %v338_v4 = vsel %vm318_vm3, %v314_v44, %v334_v60 }
 0x146   :  { %v352_v5 = vmul.f32 %v863_v63, %v341_v0  ;;  %v339_v6 = vsel %vm319_vm4, %v315_v47, %v335_v2  ;;  %v342_v7 = vmul.f32 1.050701, %v338_v4 }
 0x147   :  { %v343_v8 = vmul.f32 1.050701, %v339_v6  ;;  %v340_v9 = vsel %vm320_vm5, %v316_v49, %v336_v3 }
 0x148   :  { %v356_v10 = vsel %vm86_vm1, %v352_v5, 0.0  ;;  %v353_v11 = vmul.f32 %v863_v63, %v342_v7  ;;  %v344_v12 = vmul.f32 1.050701, %v340_v9 }
 0x149   :  { %357 = vadd.xlane.f32.xlu0 %v356_v10  ;;  %v354_v13 = vmul.f32 %v863_v63, %v343_v8 }
 0x14a   :  { %v355_v15 = vmul.f32 %v863_v63, %v344_v12  ;;  %v359_v16 = vsel %vm86_vm1, %v353_v11, 0.0 }
 0x14b   :  { %v362_v14 = vsel %vm86_vm1, %v354_v13, 0.0 }
 0x14c   :  { %363 = vadd.xlane.f32.xlu1 %v362_v14  ;;  %v365_v19 = vsel %vm86_vm1, %v355_v15, 0.0 }
 0x14d   :  { %360 = vadd.xlane.f32.xlu0 %v359_v16 }
 0x150   :  { %366 = vadd.xlane.f32.xlu1 %v365_v19 }
 0x1d6   :  { %v358_v22 = vpop.xlane.xlu0 %357 }
 0x1d7   :  { %v377_v27 = vrot.slane %v358_v22, %v1266_v24 }
 0x1d9   :  { %v364_v25 = vpop.xlane.xlu1 %363 }
 0x1da   :  { %v361_v26 = vpop.xlane.xlu0 %360  ;;  %v385_v29 = vrot.slane %v364_v25, %v1266_v24 }
 0x1db   :  { %v381_v28 = vrot.slane %v361_v26, %v1266_v24 }
 0x1dd   :  { %v367_v30 = vpop.xlane.xlu1 %366  ;;  %v391_v32 = vsel %vm390_vm6, %v381_v28, %v377_v27 }
 0x1de   :  { %v389_v21 = vrot.slane %v367_v30, %v1266_v24  ;;  %v393_v33 = vsel %vm392_vm7, %v385_v29, %v391_v32 }
 0x1e0   :  { %v395_v34 = vsel %vm394_vm8, %v389_v21, %v393_v33 }
 0x1e1   :  { %v398_v35 = vsel %vm397_vm9, %v395_v34, -inf }
 0x1e2   :  { %399 = vmax.xlane.f32.xlu0 %v398_v35 }
 0x26f   :  { %v400_v40 = vpop.xlane.xlu0 %399 }
 0x270   :  { %v405_v41 = vrot.slane %v400_v40, %v1251_v31  ;;  %v409_v42 = vrot.slane %v400_v40, %v408_v37  ;;  %v413_v43 = vrot.slane %v400_v40, %v412_v38  ;;  %v417_v44 = vrot.slane %v400_v40, %v416_v39 }
 0x272   :  { %v422_v45 = vsub.f32 %v358_v22, %v405_v41  ;;  %v423_v46 = vsub.f32 %v361_v26, %v409_v42  ;;  %v424_v47 = vsub.f32 %v364_v25, %v413_v43  ;;  %v425_v50 = vsub.f32 %v367_v30, %v417_v44 }
 0x274   :  { %v426_v48 = vmul.f32 1.442695, %v422_v45  ;;  %v428_v49 = vmul.f32 1.442695, %v423_v46  ;;  %v430_v51 = vmul.f32 1.442695, %v424_v47 }
 0x275   :  { %v432_v52 = vmul.f32 1.442695, %v425_v50 }
 0x276   :  { %970 = vpow2.f32 %v426_v48 }
 0x277   :  { %972 = vpow2.f32 %v428_v49 }
 0x278   :  { %974 = vpow2.f32 %v430_v51 }
 0x279   :  { %976 = vpow2.f32 %v432_v52 }
 0x280   :  { %v971_v53 = vpop.eup %970 }
 0x281   :  { %v973_v23 = vpop.eup %972  ;;  %439 = vperm.xlu1 %960, %v971_v53  }
 0x282   :  { %442 = vperm.xlu0 %961, %v973_v23   ;;  %v975_v54 = vpop.eup %974 }
 0x283   :  { %v977_v55 = vpop.eup %976 }
 0x285   :  { %445 = vperm.xlu1 %960, %v975_v54  }
 0x289   :  { %448 = vperm.xlu1 %960, %v977_v55  }
 0x300   :  { %v440_v56 = vpop.permute.xlu1 %439 }
 0x301   :  { %v443_v57 = vpop.permute.xlu0 %442  ;;  %v453_v60 = vrot.slane %v440_v56, %v1266_v24 }
 0x302   :  { %v457_v59 = vrot.slane %v443_v57, %v1266_v24 }
 0x304   :  { %v446_v58 = vpop.permute.xlu1 %445  ;;  %v466_v63 = vsel %vm390_vm6, %v457_v59, %v453_v60 }
 0x305   :  { %v461_v61 = vrot.slane %v446_v58, %v1266_v24 }
 0x307   :  { %v467_v2 = vsel %vm392_vm7, %v461_v61, %v466_v63 }
 0x308   :  { %v449_v62 = vpop.permute.xlu1 %448 }
 0x309   :  { %v465_v0 = vrot.slane %v449_v62, %v1266_v24 }
 0x30b   :  { %v468_v3 = vsel %vm394_vm8, %v465_v0, %v467_v2 }
 0x30c   :  { %v470_v4 = vsel %vm397_vm9, %v468_v3, 0.0 }
 0x30d   :  { %471 = vadd.xlane.f32.xlu1 %v470_v4 }
 0x39a   :  { %v472_v5 = vpop.xlane.xlu1 %471 }
 0x39b   :  { %v477_v6 = vrot.slane %v472_v5, %v1251_v31  ;;  %v481_v7 = vrot.slane %v472_v5, %v408_v37  ;;  %v485_v8 = vrot.slane %v472_v5, %v412_v38  ;;  %v489_v9 = vrot.slane %v472_v5, %v416_v39 }
 0x39d   :  { %978 = vrcp.f32 %v477_v6 }
 0x39e   :  { %980 = vrcp.f32 %v481_v7 }
 0x39f   :  { %982 = vrcp.f32 %v485_v8 }
 0x3a0   :  { %984 = vrcp.f32 %v489_v9 }
 0x3a7   :  { %v979_v10 = vpop.eup %978 }
 0x3a8   :  { %v495_v11 = vmul.f32 %v979_v10, %v971_v53  ;;  %v981_v12 = vpop.eup %980 }
 0x3a9   :  { %v497_v13 = vmul.f32 %v981_v12, %v973_v23  ;;  %v983_v14 = vpop.eup %982 }
 0x3aa   :  { %504 = vperm.xlu0 %961, %v495_v11   ;;  %v499_v15 = vmul.f32 %v983_v14, %v975_v54  ;;  %v985_v16 = vpop.eup %984 }
 0x3ab   :  { %v501_v19 = vmul.f32 %v985_v16, %v977_v55 }
 0x3ae   :  { %585 = vperm.xlu0 %961, %v497_v13  }
 0x3b2   :  { %665 = vperm.xlu0 %961, %v499_v15  }
 0x3b6   :  { %745 = vperm.xlu0 %961, %v501_v19  }
 0x429   :  { %v505_v31 = vpop.permute.xlu0 %504 }
 0x42a   :  { %v509_v20 = vrot.slane %v505_v31, %v1266_v24 }
 0x42c   :  { %917 = vmatmul.mubr.msk.f32.vlgmr.msra.gmra.mrb[2].mxu1 %vm510_vm10, %v509_v20 }
 0x42d   :  { %v586_v22 = vpop.permute.xlu0 %585  ;;  %925 = vmatpush3.msra.mxu1 %v1227_v17  ;;  %926 = vmatprep.mubr.msk.f32.mxu1 %vm1111_vm0, %v1112_v1 }
 0x42e   :  { %v590_v25 = vrot.slane %v586_v22, %v1266_v24 }
 0x430   :  { %922 = vmatmul.mubr.msk.f32.vlgmr.msra.gmra.mrb[4].mxu0 %vm510_vm10, %v590_v25 }
 0x431   :  { %v666_v26 = vpop.permute.xlu0 %665  ;;  %930 = vmatpush3.msra.mxu0 %v1236_v18  ;;  %931 = vmatprep.mubr.msk.f32.mxu0 %vm1111_vm0, %v1112_v1 }
 0x432   :  { %v670_v27 = vrot.slane %v666_v26, %v1266_v24 }
 0x434   :  { %927 = vmatmul.mubr.msk.f32.vlgmr.msra.gmra.mrb[4].mxu1 %vm510_vm10, %v670_v27 }
 0x435   :  { %v746_v28 = vpop.permute.xlu0 %745 }
 0x436   :  { %v750_v29 = vrot.slane %v746_v28, %v1266_v24 }
 0x438   :  { %932 = vmatmul.mubr.msk.f32.vlgmr.msra.gmra.mrb[6].mxu0 %vm510_vm10, %v750_v29 }
 0x4ff   :  { %v579_v17 = vpop.f32.mrb[2].mxu1 }
 0x500   :  { %v918_v30 = vpop.f32.mrb[3].mxu1 }
 0x503   :  { %v659_v32 = vpop.f32.mrb[4].mxu0 }
 0x504   :  { %v827_v21 = vrot.slane %v659_v32, 7  ;;  %v923_v33 = vpop.f32.mrb[5].mxu0 }
 0x506   :  { %v828_v34 = vsel %vm390_vm6, %v827_v21, %v579_v17 }
 0x507   :  { %v739_v35 = vpop.f32.mrb[4].mxu1 }
 0x508   :  { %v829_v36 = vrot.slane %v739_v35, 6  ;;  %v928_v18 = vpop.f32.mrb[5].mxu1 }
 0x50a   :  { %v830_v37 = vsel %vm392_vm7, %v829_v36, %v828_v34 }
 0x50b   :  { %v819_v1 = vpop.f32.mrb[6].mxu0 }
 0x50c   :  { %v831_v38 = vrot.slane %v819_v1, 5  ;;  %v933_v39 = vpop.f32.mrb[7].mxu0 }
 0x50e   :  { %v832_v24 = vsel %vm394_vm8, %v831_v38, %v830_v37 }
 0x50f   :  { %835 = vst.msk [vmem:[#allocation10] sm:$0xf] %vm834_vm11, %v832_v24 }
 0x510   :  { %1085 = shalt.err (!%p1082_p8)
}
 0x511   :  { %s1086_s26 = scalar_lea.hbm %s1320_s6, 64 }
 0x512   :  { %p1087_p9 = scmp.ne.s32.totalorder %s1320_s6, %s1086_s26  ;;  %p1090_p10 = scmp.lt.u32.totalorder %s1086_s26, %s1320_s6 }
 0x514   :  { %p1092_p11 = pnand %p1090_p10, %p1087_p9 }
 0x516   :  { %1095 = shalt.err (!%p1092_p11)
}
 0x517   :  { %845 = dma.vmem_to_hbm [thread:$0]  %s843_s21, 64, %s1320_s6, [#allocation4]  }
 0x518   :  { %1102 = dma.done.wait [#allocation4], 64  }
 0x519   :  { %1103 = vsyncadd [#allocation4], 4294967232 }
 0x51a   :  { %849 = vsyncpa [#allocation3], 1 }
 0x51b   :  { %850 = vsyncpa [#allocation6], 1 }
 0x51c   :  { %851 = vsyncpa [#allocation9], 1 }
 0x51d   :  { %852 = vsyncpa [#allocation4], 1 }

</bundles_post_ra>
